<compile_context>
chip_gen: v5e
topology: v5e:2x2
jax: 0.10.0
libtpu: 0.0.40
codegen_flags: <defaults>
</compile_context>

<pallas_src>
import jax
import jax.numpy as jnp
from jax.experimental import pallas as pl
from jax.experimental.pallas import tpu as pltpu


def gru_recurrence_kernel(gi_r_ref, gi_z_ref, gi_n_ref,
                          whh_ref, bhh_n_ref, h_out_ref):
    """Serial GRU recurrence over time for one batch tile.

    gi_r_ref : (S, TB, H)  x_t @ W_ih_r + b_ih_r + b_hh_r   (bias pre-folded)
    gi_z_ref : (S, TB, H)  x_t @ W_ih_z + b_ih_z + b_hh_z   (bias pre-folded)
    gi_n_ref : (S, TB, H)  x_t @ W_ih_n + b_ih_n
    whh_ref  : (3, H, H)   hidden-to-hidden weights, gate-separated, (in, out)
    bhh_n_ref: (1, H)      b_hh_n (stays inside the r-scaled term)
    h_out_ref: (TB, H)     final hidden state (lane-dense output)
    """
    S = gi_r_ref.shape[0]

    # Grid-invariant operands: load / broadcast ONCE, outside the time loop.
    whh_r = whh_ref[0]
    whh_z = whh_ref[1]
    whh_n = whh_ref[2]
    bhh_n = jnp.broadcast_to(bhh_n_ref[...], h_out_ref.shape)  # hoisted bcast

    def step(t, h):
        # Only the h-dependent work stays on the serial critical path.
        gh_r = jnp.dot(h, whh_r, preferred_element_type=jnp.float32)
        gh_z = jnp.dot(h, whh_z, preferred_element_type=jnp.float32)
        gh_n = jnp.dot(h, whh_n, preferred_element_type=jnp.float32) + bhh_n
        # PyTorch nn.GRU gate order: reset, update, new (b_hh_n inside r-scale).
        r = jax.nn.sigmoid(gi_r_ref[t] + gh_r)
        z = jax.nn.sigmoid(gi_z_ref[t] + gh_z)
        n = jnp.tanh(gi_n_ref[t] + r * gh_n)
        return (1.0 - z) * n + z * h

    h0 = jnp.zeros(h_out_ref.shape, jnp.float32)
    h_out_ref[...] = jax.lax.fori_loop(0, S, step, h0, unroll=True)


def time_series_model_forward(src, params, *, batch_tile=None):
    """src: (batch, seq, feature) float32 -> (batch,) float32."""
    # glue: torch.transpose(src, 0, 1)  -> time-major
    x = jnp.transpose(src, (1, 0, 2)).astype(jnp.float32)    # (S, B, F)
    S, B, F = x.shape
    H = params["whh"].shape[-1]
    TB = B if batch_tile is None else batch_tile
    assert B % TB == 0

    # Hoisted input projection (no dependence on h): one batched matmul over
    # all (S*B) rows per gate, done by XLA on full MXU tiles.
    gi = jnp.einsum("sbf,gfh->gsbh", x, params["wih"],
                    preferred_element_type=jnp.float32) \
         + params["bih"][:, None]                             # (3, S, B, H)
    # Fold the h-independent hidden biases (r, z gates) into the precomputed
    # preactivations; b_hh_n must stay inside the r-scaled term (PyTorch).
    gi_r = gi[0] + params["bhh"][0]
    gi_z = gi[1] + params["bhh"][1]
    gi_n = gi[2]
    bhh_n = params["bhh"][2]                                  # (1, H)

    h_final = pl.pallas_call(
        gru_recurrence_kernel,
        out_shape=jax.ShapeDtypeStruct((B, H), jnp.float32),
        grid_spec=pltpu.PrefetchScalarGridSpec(
            num_scalar_prefetch=0,
            grid=(B // TB,),                                  # batch tiles only
            in_specs=[
                pl.BlockSpec((S, TB, H), lambda b: (0, b, 0)),   # gi_r
                pl.BlockSpec((S, TB, H), lambda b: (0, b, 0)),   # gi_z
                pl.BlockSpec((S, TB, H), lambda b: (0, b, 0)),   # gi_n
                pl.BlockSpec((3, H, H),  lambda b: (0, 0, 0)),   # W_hh (gates)
                pl.BlockSpec((1, H),     lambda b: (0, 0)),      # b_hh_n
            ],
            out_specs=pl.BlockSpec((TB, H), lambda b: (b, 0)),
        ),
        compiler_params=pltpu.CompilerParams(
            dimension_semantics=("parallel",)),               # batch is parallel
    )(gi_r, gi_z, gi_n, params["whh"], bhh_n)

    # Linear head (H -> 1) in XLA: keeps the kernel output lane-dense and
    # avoids an N=1 MXU pass / width-1 masked store inside the kernel.
    return (h_final @ params["wl"] + params["bl"])[:, 0]     # .squeeze(1)


def reference_forward(src, params):
    """Pure-JAX reference (mirrors torch.nn.GRU + nn.Linear)."""
    x = jnp.transpose(src, (1, 0, 2)).astype(jnp.float32)
    S, B, F = x.shape
    H = params["whh"].shape[-1]
    h = jnp.zeros((B, H), jnp.float32)
    for t in range(S):
        gi = jnp.einsum("bf,gfh->gbh", x[t], params["wih"]) + params["bih"]
        gh = jnp.einsum("bh,ghk->gbk", h, params["whh"]) + params["bhh"]
        r = jax.nn.sigmoid(gi[0] + gh[0])
        z = jax.nn.sigmoid(gi[1] + gh[1])
        n = jnp.tanh(gi[2] + r * gh[2])
        h = (1.0 - z) * n + z * h
    return (h @ params["wl"] + params["bl"])[:, 0]


def init_params(key, feature, hidden):
    k = jax.random.split(key, 6)
    s = 1.0 / jnp.sqrt(hidden)
    return {
        # gate-separated layouts: leading axis = (reset, update, new)
        "wih": jax.random.uniform(k[0], (3, feature, hidden), jnp.float32, -s, s),
        "whh": jax.random.uniform(k[1], (3, hidden, hidden), jnp.float32, -s, s),
        "bih": jax.random.uniform(k[2], (3, 1, hidden), jnp.float32, -s, s),
        "bhh": jax.random.uniform(k[3], (3, 1, hidden), jnp.float32, -s, s),
        "wl":  jax.random.uniform(k[4], (hidden, 1), jnp.float32, -s, s),
        "bl":  jax.random.uniform(k[5], (1,), jnp.float32, -s, s),
    }


if __name__ == "__main__":
    batch, seq, feature, hidden = 8, 8, 16, 32
    key = jax.random.PRNGKey(0)
    k_x, k_p = jax.random.split(key)
    src = jax.random.normal(k_x, (batch, seq, feature), jnp.float32)
    params = init_params(k_p, feature, hidden)

    out = jax.block_until_ready(time_series_model_forward(src, params))
    ref = reference_forward(src, params)

    assert out.shape == (batch,), out.shape
    assert jnp.allclose(out, ref, atol=1e-4, rtol=1e-4), (out, ref)
    print("KERNEL_OK")
</pallas_src>

<mosaic_0001>
module attributes {stable_mosaic.version = 11 : i64} {
  func.func @gru_recurrence_kernel(%arg0: i32, %arg1: memref<8x8x32xf32, #tpu.memory_space<vmem>>, %arg2: memref<8x8x32xf32, #tpu.memory_space<vmem>>, %arg3: memref<8x8x32xf32, #tpu.memory_space<vmem>>, %arg4: memref<3x32x32xf32, #tpu.memory_space<vmem>>, %arg5: memref<1x32xf32, #tpu.memory_space<vmem>>, %arg6: memref<8x32xf32, #tpu.memory_space<vmem>>) attributes {dimension_semantics = [#tpu.dimension_semantics<parallel>], iteration_bounds = array<i64: 1>, scalar_prefetch = 0 : i64, scratch_operands = 0 : i64, tpu.core_type = #tpu.core_type<tc>, window_params = [{transform_indices = @transform_0, window_bounds = array<i64: 8, 8, 32>}, {transform_indices = @transform_1, window_bounds = array<i64: 8, 8, 32>}, {transform_indices = @transform_2, window_bounds = array<i64: 8, 8, 32>}, {pipeline_mode = #tpu.pipeline_mode<synchronous>, transform_indices = @transform_3, window_bounds = array<i64: 3, 32, 32>}, {pipeline_mode = #tpu.pipeline_mode<synchronous>, transform_indices = @transform_4, window_bounds = array<i64: 1, 32>}, {transform_indices = @transform_5, window_bounds = array<i64: 8, 32>}]} {
    %c0 = arith.constant 0 : index
    %c0_0 = arith.constant 0 : index
    %c0_1 = arith.constant 0 : index
    %0 = vector.load %arg4[%c0, %c0_0, %c0_1] : memref<3x32x32xf32, #tpu.memory_space<vmem>>, vector<1x32x32xf32>
    %1 = vector.shape_cast %0 : vector<1x32x32xf32> to vector<32x32xf32>
    %c1 = arith.constant 1 : index
    %c0_2 = arith.constant 0 : index
    %c0_3 = arith.constant 0 : index
    %2 = vector.load %arg4[%c1, %c0_2, %c0_3] : memref<3x32x32xf32, #tpu.memory_space<vmem>>, vector<1x32x32xf32>
    %3 = vector.shape_cast %2 : vector<1x32x32xf32> to vector<32x32xf32>
    %c2 = arith.constant 2 : index
    %c0_4 = arith.constant 0 : index
    %c0_5 = arith.constant 0 : index
    %4 = vector.load %arg4[%c2, %c0_4, %c0_5] : memref<3x32x32xf32, #tpu.memory_space<vmem>>, vector<1x32x32xf32>
    %5 = vector.shape_cast %4 : vector<1x32x32xf32> to vector<32x32xf32>
    %c0_6 = arith.constant 0 : index
    %c0_7 = arith.constant 0 : index
    %6 = vector.load %arg5[%c0_6, %c0_7] : memref<1x32xf32, #tpu.memory_space<vmem>>, vector<1x32xf32>
    %7 = vector.shape_cast %6 : vector<1x32xf32> to vector<1x32xf32>
    %8 = vector.broadcast %7 : vector<1x32xf32> to vector<8x32xf32>
    %cst = arith.constant 0.000000e+00 : f32
    %9 = vector.broadcast %cst : f32 to vector<8x32xf32>
    %c0_i32 = arith.constant 0 : i32
    %cst_8 = arith.constant dense<0.000000e+00> : vector<8x32xf32>
    %10 = tpu.matmul %9, %1, %cst_8 {dimension_numbers = #tpu.dot_dimension_numbers<[1], [0], [0], [1], [0, 0, 1, 1], [], []>} : vector<8x32xf32>, vector<32x32xf32>, vector<8x32xf32> -> vector<8x32xf32>
    %cst_9 = arith.constant dense<0.000000e+00> : vector<8x32xf32>
    %11 = tpu.matmul %9, %3, %cst_9 {dimension_numbers = #tpu.dot_dimension_numbers<[1], [0], [0], [1], [0, 0, 1, 1], [], []>} : vector<8x32xf32>, vector<32x32xf32>, vector<8x32xf32> -> vector<8x32xf32>
    %cst_10 = arith.constant dense<0.000000e+00> : vector<8x32xf32>
    %12 = tpu.matmul %9, %5, %cst_10 {dimension_numbers = #tpu.dot_dimension_numbers<[1], [0], [0], [1], [0, 0, 1, 1], [], []>} : vector<8x32xf32>, vector<32x32xf32>, vector<8x32xf32> -> vector<8x32xf32>
    %13 = arith.addf %12, %8 : vector<8x32xf32>
    %14 = arith.index_cast %c0_i32 : i32 to index
    %c0_11 = arith.constant 0 : index
    %c0_12 = arith.constant 0 : index
    %15 = vector.load %arg1[%14, %c0_11, %c0_12] : memref<8x8x32xf32, #tpu.memory_space<vmem>>, vector<1x8x32xf32>
    %16 = vector.shape_cast %15 : vector<1x8x32xf32> to vector<8x32xf32>
    %17 = arith.addf %16, %10 : vector<8x32xf32>
    %18 = arith.negf %17 : vector<8x32xf32>
    %19 = math.exp %18 : vector<8x32xf32>
    %cst_13 = arith.constant 1.000000e+00 : f32
    %20 = vector.broadcast %cst_13 : f32 to vector<8x32xf32>
    %21 = arith.addf %20, %19 : vector<8x32xf32>
    %22 = arith.divf %20, %21 : vector<8x32xf32>
    %23 = arith.index_cast %c0_i32 : i32 to index
    %c0_14 = arith.constant 0 : index
    %c0_15 = arith.constant 0 : index
    %24 = vector.load %arg2[%23, %c0_14, %c0_15] : memref<8x8x32xf32, #tpu.memory_space<vmem>>, vector<1x8x32xf32>
    %25 = vector.shape_cast %24 : vector<1x8x32xf32> to vector<8x32xf32>
    %26 = arith.addf %25, %11 : vector<8x32xf32>
    %27 = arith.negf %26 : vector<8x32xf32>
    %28 = math.exp %27 : vector<8x32xf32>
    %cst_16 = arith.constant 1.000000e+00 : f32
    %29 = vector.broadcast %cst_16 : f32 to vector<8x32xf32>
    %30 = arith.addf %29, %28 : vector<8x32xf32>
    %31 = arith.divf %29, %30 : vector<8x32xf32>
    %32 = arith.index_cast %c0_i32 : i32 to index
    %c0_17 = arith.constant 0 : index
    %c0_18 = arith.constant 0 : index
    %33 = vector.load %arg3[%32, %c0_17, %c0_18] : memref<8x8x32xf32, #tpu.memory_space<vmem>>, vector<1x8x32xf32>
    %34 = vector.shape_cast %33 : vector<1x8x32xf32> to vector<8x32xf32>
    %35 = arith.mulf %22, %13 : vector<8x32xf32>
    %36 = arith.addf %34, %35 : vector<8x32xf32>
    %37 = math.tanh %36 : vector<8x32xf32>
    %cst_19 = arith.constant 1.000000e+00 : f32
    %38 = vector.broadcast %cst_19 : f32 to vector<8x32xf32>
    %39 = arith.subf %38, %31 : vector<8x32xf32>
    %40 = arith.mulf %39, %37 : vector<8x32xf32>
    %41 = arith.mulf %31, %9 : vector<8x32xf32>
    %42 = arith.addf %40, %41 : vector<8x32xf32>
    %c1_i32 = arith.constant 1 : i32
    %cst_20 = arith.constant dense<0.000000e+00> : vector<8x32xf32>
    %43 = tpu.matmul %42, %1, %cst_20 {dimension_numbers = #tpu.dot_dimension_numbers<[1], [0], [0], [1], [0, 0, 1, 1], [], []>} : vector<8x32xf32>, vector<32x32xf32>, vector<8x32xf32> -> vector<8x32xf32>
    %cst_21 = arith.constant dense<0.000000e+00> : vector<8x32xf32>
    %44 = tpu.matmul %42, %3, %cst_21 {dimension_numbers = #tpu.dot_dimension_numbers<[1], [0], [0], [1], [0, 0, 1, 1], [], []>} : vector<8x32xf32>, vector<32x32xf32>, vector<8x32xf32> -> vector<8x32xf32>
    %cst_22 = arith.constant dense<0.000000e+00> : vector<8x32xf32>
    %45 = tpu.matmul %42, %5, %cst_22 {dimension_numbers = #tpu.dot_dimension_numbers<[1], [0], [0], [1], [0, 0, 1, 1], [], []>} : vector<8x32xf32>, vector<32x32xf32>, vector<8x32xf32> -> vector<8x32xf32>
    %46 = arith.addf %45, %8 : vector<8x32xf32>
    %47 = arith.index_cast %c1_i32 : i32 to index
    %c0_23 = arith.constant 0 : index
    %c0_24 = arith.constant 0 : index
    %48 = vector.load %arg1[%47, %c0_23, %c0_24] : memref<8x8x32xf32, #tpu.memory_space<vmem>>, vector<1x8x32xf32>
    %49 = vector.shape_cast %48 : vector<1x8x32xf32> to vector<8x32xf32>
    %50 = arith.addf %49, %43 : vector<8x32xf32>
    %51 = arith.negf %50 : vector<8x32xf32>
    %52 = math.exp %51 : vector<8x32xf32>
    %cst_25 = arith.constant 1.000000e+00 : f32
    %53 = vector.broadcast %cst_25 : f32 to vector<8x32xf32>
    %54 = arith.addf %53, %52 : vector<8x32xf32>
    %55 = arith.divf %53, %54 : vector<8x32xf32>
    %56 = arith.index_cast %c1_i32 : i32 to index
    %c0_26 = arith.constant 0 : index
    %c0_27 = arith.constant 0 : index
    %57 = vector.load %arg2[%56, %c0_26, %c0_27] : memref<8x8x32xf32, #tpu.memory_space<vmem>>, vector<1x8x32xf32>
    %58 = vector.shape_cast %57 : vector<1x8x32xf32> to vector<8x32xf32>
    %59 = arith.addf %58, %44 : vector<8x32xf32>
    %60 = arith.negf %59 : vector<8x32xf32>
    %61 = math.exp %60 : vector<8x32xf32>
    %cst_28 = arith.constant 1.000000e+00 : f32
    %62 = vector.broadcast %cst_28 : f32 to vector<8x32xf32>
    %63 = arith.addf %62, %61 : vector<8x32xf32>
    %64 = arith.divf %62, %63 : vector<8x32xf32>
    %65 = arith.index_cast %c1_i32 : i32 to index
    %c0_29 = arith.constant 0 : index
    %c0_30 = arith.constant 0 : index
    %66 = vector.load %arg3[%65, %c0_29, %c0_30] : memref<8x8x32xf32, #tpu.memory_space<vmem>>, vector<1x8x32xf32>
    %67 = vector.shape_cast %66 : vector<1x8x32xf32> to vector<8x32xf32>
    %68 = arith.mulf %55, %46 : vector<8x32xf32>
    %69 = arith.addf %67, %68 : vector<8x32xf32>
    %70 = math.tanh %69 : vector<8x32xf32>
    %cst_31 = arith.constant 1.000000e+00 : f32
    %71 = vector.broadcast %cst_31 : f32 to vector<8x32xf32>
    %72 = arith.subf %71, %64 : vector<8x32xf32>
    %73 = arith.mulf %72, %70 : vector<8x32xf32>
    %74 = arith.mulf %64, %42 : vector<8x32xf32>
    %75 = arith.addf %73, %74 : vector<8x32xf32>
    %c2_i32 = arith.constant 2 : i32
    %cst_32 = arith.constant dense<0.000000e+00> : vector<8x32xf32>
    %76 = tpu.matmul %75, %1, %cst_32 {dimension_numbers = #tpu.dot_dimension_numbers<[1], [0], [0], [1], [0, 0, 1, 1], [], []>} : vector<8x32xf32>, vector<32x32xf32>, vector<8x32xf32> -> vector<8x32xf32>
    %cst_33 = arith.constant dense<0.000000e+00> : vector<8x32xf32>
    %77 = tpu.matmul %75, %3, %cst_33 {dimension_numbers = #tpu.dot_dimension_numbers<[1], [0], [0], [1], [0, 0, 1, 1], [], []>} : vector<8x32xf32>, vector<32x32xf32>, vector<8x32xf32> -> vector<8x32xf32>
    %cst_34 = arith.constant dense<0.000000e+00> : vector<8x32xf32>
    %78 = tpu.matmul %75, %5, %cst_34 {dimension_numbers = #tpu.dot_dimension_numbers<[1], [0], [0], [1], [0, 0, 1, 1], [], []>} : vector<8x32xf32>, vector<32x32xf32>, vector<8x32xf32> -> vector<8x32xf32>
    %79 = arith.addf %78, %8 : vector<8x32xf32>
    %80 = arith.index_cast %c2_i32 : i32 to index
    %c0_35 = arith.constant 0 : index
    %c0_36 = arith.constant 0 : index
    %81 = vector.load %arg1[%80, %c0_35, %c0_36] : memref<8x8x32xf32, #tpu.memory_space<vmem>>, vector<1x8x32xf32>
    %82 = vector.shape_cast %81 : vector<1x8x32xf32> to vector<8x32xf32>
    %83 = arith.addf %82, %76 : vector<8x32xf32>
    %84 = arith.negf %83 : vector<8x32xf32>
    %85 = math.exp %84 : vector<8x32xf32>
    %cst_37 = arith.constant 1.000000e+00 : f32
    %86 = vector.broadcast %cst_37 : f32 to vector<8x32xf32>
    %87 = arith.addf %86, %85 : vector<8x32xf32>
    %88 = arith.divf %86, %87 : vector<8x32xf32>
    %89 = arith.index_cast %c2_i32 : i32 to index
    %c0_38 = arith.constant 0 : index
    %c0_39 = arith.constant 0 : index
    %90 = vector.load %arg2[%89, %c0_38, %c0_39] : memref<8x8x32xf32, #tpu.memory_space<vmem>>, vector<1x8x32xf32>
    %91 = vector.shape_cast %90 : vector<1x8x32xf32> to vector<8x32xf32>
    %92 = arith.addf %91, %77 : vector<8x32xf32>
    %93 = arith.negf %92 : vector<8x32xf32>
    %94 = math.exp %93 : vector<8x32xf32>
    %cst_40 = arith.constant 1.000000e+00 : f32
    %95 = vector.broadcast %cst_40 : f32 to vector<8x32xf32>
    %96 = arith.addf %95, %94 : vector<8x32xf32>
    %97 = arith.divf %95, %96 : vector<8x32xf32>
    %98 = arith.index_cast %c2_i32 : i32 to index
    %c0_41 = arith.constant 0 : index
    %c0_42 = arith.constant 0 : index
    %99 = vector.load %arg3[%98, %c0_41, %c0_42] : memref<8x8x32xf32, #tpu.memory_space<vmem>>, vector<1x8x32xf32>
    %100 = vector.shape_cast %99 : vector<1x8x32xf32> to vector<8x32xf32>
    %101 = arith.mulf %88, %79 : vector<8x32xf32>
    %102 = arith.addf %100, %101 : vector<8x32xf32>
    %103 = math.tanh %102 : vector<8x32xf32>
    %cst_43 = arith.constant 1.000000e+00 : f32
    %104 = vector.broadcast %cst_43 : f32 to vector<8x32xf32>
    %105 = arith.subf %104, %97 : vector<8x32xf32>
    %106 = arith.mulf %105, %103 : vector<8x32xf32>
    %107 = arith.mulf %97, %75 : vector<8x32xf32>
    %108 = arith.addf %106, %107 : vector<8x32xf32>
    %c3_i32 = arith.constant 3 : i32
    %cst_44 = arith.constant dense<0.000000e+00> : vector<8x32xf32>
    %109 = tpu.matmul %108, %1, %cst_44 {dimension_numbers = #tpu.dot_dimension_numbers<[1], [0], [0], [1], [0, 0, 1, 1], [], []>} : vector<8x32xf32>, vector<32x32xf32>, vector<8x32xf32> -> vector<8x32xf32>
    %cst_45 = arith.constant dense<0.000000e+00> : vector<8x32xf32>
    %110 = tpu.matmul %108, %3, %cst_45 {dimension_numbers = #tpu.dot_dimension_numbers<[1], [0], [0], [1], [0, 0, 1, 1], [], []>} : vector<8x32xf32>, vector<32x32xf32>, vector<8x32xf32> -> vector<8x32xf32>
    %cst_46 = arith.constant dense<0.000000e+00> : vector<8x32xf32>
    %111 = tpu.matmul %108, %5, %cst_46 {dimension_numbers = #tpu.dot_dimension_numbers<[1], [0], [0], [1], [0, 0, 1, 1], [], []>} : vector<8x32xf32>, vector<32x32xf32>, vector<8x32xf32> -> vector<8x32xf32>
    %112 = arith.addf %111, %8 : vector<8x32xf32>
    %113 = arith.index_cast %c3_i32 : i32 to index
    %c0_47 = arith.constant 0 : index
    %c0_48 = arith.constant 0 : index
    %114 = vector.load %arg1[%113, %c0_47, %c0_48] : memref<8x8x32xf32, #tpu.memory_space<vmem>>, vector<1x8x32xf32>
    %115 = vector.shape_cast %114 : vector<1x8x32xf32> to vector<8x32xf32>
    %116 = arith.addf %115, %109 : vector<8x32xf32>
    %117 = arith.negf %116 : vector<8x32xf32>
    %118 = math.exp %117 : vector<8x32xf32>
    %cst_49 = arith.constant 1.000000e+00 : f32
    %119 = vector.broadcast %cst_49 : f32 to vector<8x32xf32>
    %120 = arith.addf %119, %118 : vector<8x32xf32>
    %121 = arith.divf %119, %120 : vector<8x32xf32>
    %122 = arith.index_cast %c3_i32 : i32 to index
    %c0_50 = arith.constant 0 : index
    %c0_51 = arith.constant 0 : index
    %123 = vector.load %arg2[%122, %c0_50, %c0_51] : memref<8x8x32xf32, #tpu.memory_space<vmem>>, vector<1x8x32xf32>
    %124 = vector.shape_cast %123 : vector<1x8x32xf32> to vector<8x32xf32>
    %125 = arith.addf %124, %110 : vector<8x32xf32>
    %126 = arith.negf %125 : vector<8x32xf32>
    %127 = math.exp %126 : vector<8x32xf32>
    %cst_52 = arith.constant 1.000000e+00 : f32
    %128 = vector.broadcast %cst_52 : f32 to vector<8x32xf32>
    %129 = arith.addf %128, %127 : vector<8x32xf32>
    %130 = arith.divf %128, %129 : vector<8x32xf32>
    %131 = arith.index_cast %c3_i32 : i32 to index
    %c0_53 = arith.constant 0 : index
    %c0_54 = arith.constant 0 : index
    %132 = vector.load %arg3[%131, %c0_53, %c0_54] : memref<8x8x32xf32, #tpu.memory_space<vmem>>, vector<1x8x32xf32>
    %133 = vector.shape_cast %132 : vector<1x8x32xf32> to vector<8x32xf32>
    %134 = arith.mulf %121, %112 : vector<8x32xf32>
    %135 = arith.addf %133, %134 : vector<8x32xf32>
    %136 = math.tanh %135 : vector<8x32xf32>
    %cst_55 = arith.constant 1.000000e+00 : f32
    %137 = vector.broadcast %cst_55 : f32 to vector<8x32xf32>
    %138 = arith.subf %137, %130 : vector<8x32xf32>
    %139 = arith.mulf %138, %136 : vector<8x32xf32>
    %140 = arith.mulf %130, %108 : vector<8x32xf32>
    %141 = arith.addf %139, %140 : vector<8x32xf32>
    %c4_i32 = arith.constant 4 : i32
    %cst_56 = arith.constant dense<0.000000e+00> : vector<8x32xf32>
    %142 = tpu.matmul %141, %1, %cst_56 {dimension_numbers = #tpu.dot_dimension_numbers<[1], [0], [0], [1], [0, 0, 1, 1], [], []>} : vector<8x32xf32>, vector<32x32xf32>, vector<8x32xf32> -> vector<8x32xf32>
    %cst_57 = arith.constant dense<0.000000e+00> : vector<8x32xf32>
    %143 = tpu.matmul %141, %3, %cst_57 {dimension_numbers = #tpu.dot_dimension_numbers<[1], [0], [0], [1], [0, 0, 1, 1], [], []>} : vector<8x32xf32>, vector<32x32xf32>, vector<8x32xf32> -> vector<8x32xf32>
    %cst_58 = arith.constant dense<0.000000e+00> : vector<8x32xf32>
    %144 = tpu.matmul %141, %5, %cst_58 {dimension_numbers = #tpu.dot_dimension_numbers<[1], [0], [0], [1], [0, 0, 1, 1], [], []>} : vector<8x32xf32>, vector<32x32xf32>, vector<8x32xf32> -> vector<8x32xf32>
    %145 = arith.addf %144, %8 : vector<8x32xf32>
    %146 = arith.index_cast %c4_i32 : i32 to index
    %c0_59 = arith.constant 0 : index
    %c0_60 = arith.constant 0 : index
    %147 = vector.load %arg1[%146, %c0_59, %c0_60] : memref<8x8x32xf32, #tpu.memory_space<vmem>>, vector<1x8x32xf32>
    %148 = vector.shape_cast %147 : vector<1x8x32xf32> to vector<8x32xf32>
    %149 = arith.addf %148, %142 : vector<8x32xf32>
    %150 = arith.negf %149 : vector<8x32xf32>
    %151 = math.exp %150 : vector<8x32xf32>
    %cst_61 = arith.constant 1.000000e+00 : f32
    %152 = vector.broadcast %cst_61 : f32 to vector<8x32xf32>
    %153 = arith.addf %152, %151 : vector<8x32xf32>
    %154 = arith.divf %152, %153 : vector<8x32xf32>
    %155 = arith.index_cast %c4_i32 : i32 to index
    %c0_62 = arith.constant 0 : index
    %c0_63 = arith.constant 0 : index
    %156 = vector.load %arg2[%155, %c0_62, %c0_63] : memref<8x8x32xf32, #tpu.memory_space<vmem>>, vector<1x8x32xf32>
    %157 = vector.shape_cast %156 : vector<1x8x32xf32> to vector<8x32xf32>
    %158 = arith.addf %157, %143 : vector<8x32xf32>
    %159 = arith.negf %158 : vector<8x32xf32>
    %160 = math.exp %159 : vector<8x32xf32>
    %cst_64 = arith.constant 1.000000e+00 : f32
    %161 = vector.broadcast %cst_64 : f32 to vector<8x32xf32>
    %162 = arith.addf %161, %160 : vector<8x32xf32>
    %163 = arith.divf %161, %162 : vector<8x32xf32>
    %164 = arith.index_cast %c4_i32 : i32 to index
    %c0_65 = arith.constant 0 : index
    %c0_66 = arith.constant 0 : index
    %165 = vector.load %arg3[%164, %c0_65, %c0_66] : memref<8x8x32xf32, #tpu.memory_space<vmem>>, vector<1x8x32xf32>
    %166 = vector.shape_cast %165 : vector<1x8x32xf32> to vector<8x32xf32>
    %167 = arith.mulf %154, %145 : vector<8x32xf32>
    %168 = arith.addf %166, %167 : vector<8x32xf32>
    %169 = math.tanh %168 : vector<8x32xf32>
    %cst_67 = arith.constant 1.000000e+00 : f32
    %170 = vector.broadcast %cst_67 : f32 to vector<8x32xf32>
    %171 = arith.subf %170, %163 : vector<8x32xf32>
    %172 = arith.mulf %171, %169 : vector<8x32xf32>
    %173 = arith.mulf %163, %141 : vector<8x32xf32>
    %174 = arith.addf %172, %173 : vector<8x32xf32>
    %c5_i32 = arith.constant 5 : i32
    %cst_68 = arith.constant dense<0.000000e+00> : vector<8x32xf32>
    %175 = tpu.matmul %174, %1, %cst_68 {dimension_numbers = #tpu.dot_dimension_numbers<[1], [0], [0], [1], [0, 0, 1, 1], [], []>} : vector<8x32xf32>, vector<32x32xf32>, vector<8x32xf32> -> vector<8x32xf32>
    %cst_69 = arith.constant dense<0.000000e+00> : vector<8x32xf32>
    %176 = tpu.matmul %174, %3, %cst_69 {dimension_numbers = #tpu.dot_dimension_numbers<[1], [0], [0], [1], [0, 0, 1, 1], [], []>} : vector<8x32xf32>, vector<32x32xf32>, vector<8x32xf32> -> vector<8x32xf32>
    %cst_70 = arith.constant dense<0.000000e+00> : vector<8x32xf32>
    %177 = tpu.matmul %174, %5, %cst_70 {dimension_numbers = #tpu.dot_dimension_numbers<[1], [0], [0], [1], [0, 0, 1, 1], [], []>} : vector<8x32xf32>, vector<32x32xf32>, vector<8x32xf32> -> vector<8x32xf32>
    %178 = arith.addf %177, %8 : vector<8x32xf32>
    %179 = arith.index_cast %c5_i32 : i32 to index
    %c0_71 = arith.constant 0 : index
    %c0_72 = arith.constant 0 : index
    %180 = vector.load %arg1[%179, %c0_71, %c0_72] : memref<8x8x32xf32, #tpu.memory_space<vmem>>, vector<1x8x32xf32>
    %181 = vector.shape_cast %180 : vector<1x8x32xf32> to vector<8x32xf32>
    %182 = arith.addf %181, %175 : vector<8x32xf32>
    %183 = arith.negf %182 : vector<8x32xf32>
    %184 = math.exp %183 : vector<8x32xf32>
    %cst_73 = arith.constant 1.000000e+00 : f32
    %185 = vector.broadcast %cst_73 : f32 to vector<8x32xf32>
    %186 = arith.addf %185, %184 : vector<8x32xf32>
    %187 = arith.divf %185, %186 : vector<8x32xf32>
    %188 = arith.index_cast %c5_i32 : i32 to index
    %c0_74 = arith.constant 0 : index
    %c0_75 = arith.constant 0 : index
    %189 = vector.load %arg2[%188, %c0_74, %c0_75] : memref<8x8x32xf32, #tpu.memory_space<vmem>>, vector<1x8x32xf32>
    %190 = vector.shape_cast %189 : vector<1x8x32xf32> to vector<8x32xf32>
    %191 = arith.addf %190, %176 : vector<8x32xf32>
    %192 = arith.negf %191 : vector<8x32xf32>
    %193 = math.exp %192 : vector<8x32xf32>
    %cst_76 = arith.constant 1.000000e+00 : f32
    %194 = vector.broadcast %cst_76 : f32 to vector<8x32xf32>
    %195 = arith.addf %194, %193 : vector<8x32xf32>
    %196 = arith.divf %194, %195 : vector<8x32xf32>
    %197 = arith.index_cast %c5_i32 : i32 to index
    %c0_77 = arith.constant 0 : index
    %c0_78 = arith.constant 0 : index
    %198 = vector.load %arg3[%197, %c0_77, %c0_78] : memref<8x8x32xf32, #tpu.memory_space<vmem>>, vector<1x8x32xf32>
    %199 = vector.shape_cast %198 : vector<1x8x32xf32> to vector<8x32xf32>
    %200 = arith.mulf %187, %178 : vector<8x32xf32>
    %201 = arith.addf %199, %200 : vector<8x32xf32>
    %202 = math.tanh %201 : vector<8x32xf32>
    %cst_79 = arith.constant 1.000000e+00 : f32
    %203 = vector.broadcast %cst_79 : f32 to vector<8x32xf32>
    %204 = arith.subf %203, %196 : vector<8x32xf32>
    %205 = arith.mulf %204, %202 : vector<8x32xf32>
    %206 = arith.mulf %196, %174 : vector<8x32xf32>
    %207 = arith.addf %205, %206 : vector<8x32xf32>
    %c6_i32 = arith.constant 6 : i32
    %cst_80 = arith.constant dense<0.000000e+00> : vector<8x32xf32>
    %208 = tpu.matmul %207, %1, %cst_80 {dimension_numbers = #tpu.dot_dimension_numbers<[1], [0], [0], [1], [0, 0, 1, 1], [], []>} : vector<8x32xf32>, vector<32x32xf32>, vector<8x32xf32> -> vector<8x32xf32>
    %cst_81 = arith.constant dense<0.000000e+00> : vector<8x32xf32>
    %209 = tpu.matmul %207, %3, %cst_81 {dimension_numbers = #tpu.dot_dimension_numbers<[1], [0], [0], [1], [0, 0, 1, 1], [], []>} : vector<8x32xf32>, vector<32x32xf32>, vector<8x32xf32> -> vector<8x32xf32>
    %cst_82 = arith.constant dense<0.000000e+00> : vector<8x32xf32>
    %210 = tpu.matmul %207, %5, %cst_82 {dimension_numbers = #tpu.dot_dimension_numbers<[1], [0], [0], [1], [0, 0, 1, 1], [], []>} : vector<8x32xf32>, vector<32x32xf32>, vector<8x32xf32> -> vector<8x32xf32>
    %211 = arith.addf %210, %8 : vector<8x32xf32>
    %212 = arith.index_cast %c6_i32 : i32 to index
    %c0_83 = arith.constant 0 : index
    %c0_84 = arith.constant 0 : index
    %213 = vector.load %arg1[%212, %c0_83, %c0_84] : memref<8x8x32xf32, #tpu.memory_space<vmem>>, vector<1x8x32xf32>
    %214 = vector.shape_cast %213 : vector<1x8x32xf32> to vector<8x32xf32>
    %215 = arith.addf %214, %208 : vector<8x32xf32>
    %216 = arith.negf %215 : vector<8x32xf32>
    %217 = math.exp %216 : vector<8x32xf32>
    %cst_85 = arith.constant 1.000000e+00 : f32
    %218 = vector.broadcast %cst_85 : f32 to vector<8x32xf32>
    %219 = arith.addf %218, %217 : vector<8x32xf32>
    %220 = arith.divf %218, %219 : vector<8x32xf32>
    %221 = arith.index_cast %c6_i32 : i32 to index
    %c0_86 = arith.constant 0 : index
    %c0_87 = arith.constant 0 : index
    %222 = vector.load %arg2[%221, %c0_86, %c0_87] : memref<8x8x32xf32, #tpu.memory_space<vmem>>, vector<1x8x32xf32>
    %223 = vector.shape_cast %222 : vector<1x8x32xf32> to vector<8x32xf32>
    %224 = arith.addf %223, %209 : vector<8x32xf32>
    %225 = arith.negf %224 : vector<8x32xf32>
    %226 = math.exp %225 : vector<8x32xf32>
    %cst_88 = arith.constant 1.000000e+00 : f32
    %227 = vector.broadcast %cst_88 : f32 to vector<8x32xf32>
    %228 = arith.addf %227, %226 : vector<8x32xf32>
    %229 = arith.divf %227, %228 : vector<8x32xf32>
    %230 = arith.index_cast %c6_i32 : i32 to index
    %c0_89 = arith.constant 0 : index
    %c0_90 = arith.constant 0 : index
    %231 = vector.load %arg3[%230, %c0_89, %c0_90] : memref<8x8x32xf32, #tpu.memory_space<vmem>>, vector<1x8x32xf32>
    %232 = vector.shape_cast %231 : vector<1x8x32xf32> to vector<8x32xf32>
    %233 = arith.mulf %220, %211 : vector<8x32xf32>
    %234 = arith.addf %232, %233 : vector<8x32xf32>
    %235 = math.tanh %234 : vector<8x32xf32>
    %cst_91 = arith.constant 1.000000e+00 : f32
    %236 = vector.broadcast %cst_91 : f32 to vector<8x32xf32>
    %237 = arith.subf %236, %229 : vector<8x32xf32>
    %238 = arith.mulf %237, %235 : vector<8x32xf32>
    %239 = arith.mulf %229, %207 : vector<8x32xf32>
    %240 = arith.addf %238, %239 : vector<8x32xf32>
    %c7_i32 = arith.constant 7 : i32
    %cst_92 = arith.constant dense<0.000000e+00> : vector<8x32xf32>
    %241 = tpu.matmul %240, %1, %cst_92 {dimension_numbers = #tpu.dot_dimension_numbers<[1], [0], [0], [1], [0, 0, 1, 1], [], []>} : vector<8x32xf32>, vector<32x32xf32>, vector<8x32xf32> -> vector<8x32xf32>
    %cst_93 = arith.constant dense<0.000000e+00> : vector<8x32xf32>
    %242 = tpu.matmul %240, %3, %cst_93 {dimension_numbers = #tpu.dot_dimension_numbers<[1], [0], [0], [1], [0, 0, 1, 1], [], []>} : vector<8x32xf32>, vector<32x32xf32>, vector<8x32xf32> -> vector<8x32xf32>
    %cst_94 = arith.constant dense<0.000000e+00> : vector<8x32xf32>
    %243 = tpu.matmul %240, %5, %cst_94 {dimension_numbers = #tpu.dot_dimension_numbers<[1], [0], [0], [1], [0, 0, 1, 1], [], []>} : vector<8x32xf32>, vector<32x32xf32>, vector<8x32xf32> -> vector<8x32xf32>
    %244 = arith.addf %243, %8 : vector<8x32xf32>
    %245 = arith.index_cast %c7_i32 : i32 to index
    %c0_95 = arith.constant 0 : index
    %c0_96 = arith.constant 0 : index
    %246 = vector.load %arg1[%245, %c0_95, %c0_96] : memref<8x8x32xf32, #tpu.memory_space<vmem>>, vector<1x8x32xf32>
    %247 = vector.shape_cast %246 : vector<1x8x32xf32> to vector<8x32xf32>
    %248 = arith.addf %247, %241 : vector<8x32xf32>
    %249 = arith.negf %248 : vector<8x32xf32>
    %250 = math.exp %249 : vector<8x32xf32>
    %cst_97 = arith.constant 1.000000e+00 : f32
    %251 = vector.broadcast %cst_97 : f32 to vector<8x32xf32>
    %252 = arith.addf %251, %250 : vector<8x32xf32>
    %253 = arith.divf %251, %252 : vector<8x32xf32>
    %254 = arith.index_cast %c7_i32 : i32 to index
    %c0_98 = arith.constant 0 : index
    %c0_99 = arith.constant 0 : index
    %255 = vector.load %arg2[%254, %c0_98, %c0_99] : memref<8x8x32xf32, #tpu.memory_space<vmem>>, vector<1x8x32xf32>
    %256 = vector.shape_cast %255 : vector<1x8x32xf32> to vector<8x32xf32>
    %257 = arith.addf %256, %242 : vector<8x32xf32>
    %258 = arith.negf %257 : vector<8x32xf32>
    %259 = math.exp %258 : vector<8x32xf32>
    %cst_100 = arith.constant 1.000000e+00 : f32
    %260 = vector.broadcast %cst_100 : f32 to vector<8x32xf32>
    %261 = arith.addf %260, %259 : vector<8x32xf32>
    %262 = arith.divf %260, %261 : vector<8x32xf32>
    %263 = arith.index_cast %c7_i32 : i32 to index
    %c0_101 = arith.constant 0 : index
    %c0_102 = arith.constant 0 : index
    %264 = vector.load %arg3[%263, %c0_101, %c0_102] : memref<8x8x32xf32, #tpu.memory_space<vmem>>, vector<1x8x32xf32>
    %265 = vector.shape_cast %264 : vector<1x8x32xf32> to vector<8x32xf32>
    %266 = arith.mulf %253, %244 : vector<8x32xf32>
    %267 = arith.addf %265, %266 : vector<8x32xf32>
    %268 = math.tanh %267 : vector<8x32xf32>
    %cst_103 = arith.constant 1.000000e+00 : f32
    %269 = vector.broadcast %cst_103 : f32 to vector<8x32xf32>
    %270 = arith.subf %269, %262 : vector<8x32xf32>
    %271 = arith.mulf %270, %268 : vector<8x32xf32>
    %272 = arith.mulf %262, %240 : vector<8x32xf32>
    %273 = arith.addf %271, %272 : vector<8x32xf32>
    %c8_i32 = arith.constant 8 : i32
    %c0_104 = arith.constant 0 : index
    %c0_105 = arith.constant 0 : index
    %274 = vector.load %arg6[%c0_104, %c0_105] : memref<8x32xf32, #tpu.memory_space<vmem>>, vector<8x32xf32>
    tpu.vector_store %arg6[%c0_104, %c0_105], %273 {strides = array<i32>} : memref<8x32xf32, #tpu.memory_space<vmem>>, vector<8x32xf32>,
    return
  }
  func.func @transform_0(%arg0: i32) -> (i32, i32, i32) {
    %c0_i32 = arith.constant 0 : i32
    %c0_i32_0 = arith.constant 0 : i32
    %c0_i32_1 = arith.constant 0 : i32
    return %c0_i32, %arg0, %c0_i32_0 : i32, i32, i32
  }
  func.func @transform_1(%arg0: i32) -> (i32, i32, i32) {
    %c0_i32 = arith.constant 0 : i32
    %c0_i32_0 = arith.constant 0 : i32
    %c0_i32_1 = arith.constant 0 : i32
    return %c0_i32, %arg0, %c0_i32_0 : i32, i32, i32
  }
  func.func @transform_2(%arg0: i32) -> (i32, i32, i32) {
    %c0_i32 = arith.constant 0 : i32
    %c0_i32_0 = arith.constant 0 : i32
    %c0_i32_1 = arith.constant 0 : i32
    return %c0_i32, %arg0, %c0_i32_0 : i32, i32, i32
  }
  func.func @transform_3(%arg0: i32) -> (i32, i32, i32) {
    %c0_i32 = arith.constant 0 : i32
    %c0_i32_0 = arith.constant 0 : i32
    %c0_i32_1 = arith.constant 0 : i32
    %c0_i32_2 = arith.constant 0 : i32
    return %c0_i32, %c0_i32_0, %c0_i32_1 : i32, i32, i32
  }
  func.func @transform_4(%arg0: i32) -> (i32, i32) {
    %c0_i32 = arith.constant 0 : i32
    %c0_i32_0 = arith.constant 0 : i32
    %c0_i32_1 = arith.constant 0 : i32
    return %c0_i32, %c0_i32_0 : i32, i32
  }
  func.func @transform_5(%arg0: i32) -> (i32, i32) {
    %c0_i32 = arith.constant 0 : i32
    %c0_i32_0 = arith.constant 0 : i32
    return %arg0, %c0_i32 : i32, i32
  }
}

</mosaic_0001>

<bundles_post_ra>
// kernel: tpu_custom_call.1
= control target key start
LH: loop header
LB: loop body
LE: loop exit
PB: predicated region body
PF: predicated region fallthrough
CT: control target
= control target key end

     0   :  { %10 = vsyncpa [#allocation3], 0  ;;  %s1534_s0 = inlined_call_operand.hbm [shape: f32[8,8,32], index: 0, kind: input, shape index: {}]   ;;  %s1535_s1 = inlined_call_operand.hbm [shape: f32[8,8,32], index: 1, kind: input, shape index: {}]   ;;  %s1536_s2 = inlined_call_operand.hbm [shape: f32[8,8,32], index: 2, kind: input, shape index: {}]   ;;  %s1537_s3 = inlined_call_operand.hbm [shape: f32[3,32,32], index: 3, kind: input, shape index: {}]   ;;  %s1538_s4 = inlined_call_operand.vmem [shape: f32[1,32], index: 4, kind: input, shape index: {}]   ;;  %s1539_s5 = inlined_call_operand.hbm [shape: f32[8,32], index: 5, kind: output, shape index: {}]  }
   0x1   :  { %11 = vsyncpa [#allocation6], 0 }
   0x2   :  { %12 = vsyncpa [#allocation9], 0 }
   0x3   :  { %13 = vsyncpa [#allocation4], 0  ;;  %s31_s20 = sshll.u32 %s1535_s1, 4  ;;  %s1302_s21 = smov [#allocation5]   ;;  %s32_s20 = int_to_ptr.hbm [resolvable:$true] %s31_s20 }
   0x4   :  { %s33_s22 = sshll.u32 %s1302_s21, 4  ;;  %s18_s25 = sshll.u32 %s1534_s0, 4  ;;  %s34_s22 = int_to_ptr.vmem [resolvable:$true] %s33_s22  ;;  %s19_s25 = int_to_ptr.hbm [resolvable:$true] %s18_s25 }
   0x5   :  { %s1303_s26 = smov 128   ;;  %s1304_s27 = smov 8  }
   0x6   :  { %39 = dma.hbm_to_vmem [thread:$0]  %s32_s20, 1024, %s34_s22, [#allocation6], %s1303_s26, %s1303_s26, %s1304_s27  }
   0x7   :  { %s1305_s28 = smov [#allocation2]   ;;  %s44_s7 = sshll.u32 %s1536_s2, 4  ;;  %s45_s7 = int_to_ptr.hbm [resolvable:$true] %s44_s7 }
   0x8   :  { %s20_s29 = sshll.u32 %s1305_s28, 4  ;;  %s57_s9 = sshll.u32 %s1537_s3, 4  ;;  %s21_s29 = int_to_ptr.vmem [resolvable:$true] %s20_s29  ;;  %s58_s9 = int_to_ptr.hbm [resolvable:$true] %s57_s9 }
   0x9   :  { %26 = dma.hbm_to_vmem [thread:$0]  %s19_s25, 1024, %s21_s29, [#allocation3], %s1303_s26, %s1303_s26, %s1304_s27  }
   0xa   :  { %s1306_s10 = smov [#allocation7]   ;;  %s1307_s0 = smov [#allocation8]  }
   0xb   :  { %s46_s11 = sshll.u32 %s1306_s10, 4  ;;  %s59_s12 = sshll.u32 %s1307_s0, 4  ;;  %s47_s11 = int_to_ptr.vmem [resolvable:$true] %s46_s11  ;;  %s60_s12 = int_to_ptr.vmem [resolvable:$true] %s59_s12 }
   0xc   :  { %52 = dma.hbm_to_vmem [thread:$0]  %s45_s7, 1024, %s47_s11, [#allocation6], %s1303_s26, %s1303_s26, %s1304_s27  }
   0xd   :  { %65 = dma.hbm_to_vmem [thread:$0]  %s58_s9, 1536, %s60_s12, [#allocation9], %s1303_s26, %s1303_s26, %s1304_s27  }
   0xe   :  { %1294 = dma.done.wait [#allocation3], 1024  }
   0xf   :  { %1295 = vsyncadd [#allocation3], 4294966272 }
  0x10   :  { %1296 = dma.done.wait [#allocation6], 2048  }
  0x11   :  { %1297 = vsyncadd [#allocation6], 4294965248 }
  0x12   :  { %1298 = dma.done.wait [#allocation9], 1536  }
  0x13   :  { %1299 = vsyncadd [#allocation9], 4294965760  ;;  %v1352_v0 = vld [vmem:[#allocation8 + $0x18] sm:$0xff]  ;;  %v1356_v2 = vld [vmem:[#allocation8 + $0x10] sm:$0xff]  ;;  %v1308_v11 = vmov 0.0   ;;  %vm102_vm8 = vcmask 261120  }
  0x14   :  { %v1354_v1 = vld [vmem:[#allocation8 + $0x38] sm:$0xff]  ;;  %118 = vmatpush.msra.mxu0 %v1352_v0  ;;  %v1360_v3 = vld [vmem:[#allocation8 + $0x30] sm:$0xff]  ;;  %v1362_v4 = vld [vmem:[#allocation8 + $0x8] sm:$0xff]  ;;  %231 = vmatpush.msra.mxu3 %v1352_v0  ;;  %s1036_s16 = sshll.u32 %s1539_s5, 4  ;;  %s1037_s16 = int_to_ptr.hbm [resolvable:$true] %s1036_s16 }
  0x15   :  { %138 = vmatpush.msra.mxu1 %v1354_v1  ;;  %v1364_v5 = vld [vmem:[#allocation8 + $0x28] sm:$0xff]  ;;  %v1366_v6 = vld [vmem:[#allocation8 + $0x58] sm:$0xff]  ;;  %v1371_v7 = vld [vmem:[#allocation8 + $0x50] sm:$0xff] }
  0x16   :  { %119 = vmatpush.msra.mxu0 %v1356_v2  ;;  %v1373_v8 = vld [vmem:[#allocation8] sm:$0xff]  ;;  %158 = vmatpush.msra.mxu2 %v1366_v6  ;;  %v1382_v10 = vld [vmem:[#allocation8 + $0x48] sm:$0xff] }
  0x17   :  { %139 = vmatpush.msra.mxu1 %v1360_v3  ;;  %v1375_v9 = vld [vmem:[#allocation8 + $0x20] sm:$0xff]  ;;  %232 = vmatpush.msra.mxu3 %v1356_v2  ;;  %v302_v56 = vld [vmem:[#allocation5 + $0x8] sm:$0xff] }
  0x18   :  { %120 = vmatpush.msra.mxu0 %v1362_v4  ;;  %159 = vmatpush.msra.mxu2 %v1371_v7  ;;  %v1387_v12 = vld [vmem:[#allocation8 + $0x40] sm:$0xff]  ;;  %v280_v60 = vld [vmem:[#allocation2 + $0x8] sm:$0xff] }
  0x19   :  { %140 = vmatpush.msra.mxu1 %v1364_v5  ;;  %233 = vmatpush.msra.mxu3 %v1362_v4  ;;  %v166_v13 = vld [vmem:[#allocation2] sm:$0xff] }
  0x1a   :  { %121 = vmatpush.msra.mxu0 %v1373_v8  ;;  %160 = vmatpush.msra.mxu2 %v1382_v10  ;;  %v187_v14 = vld [vmem:[#allocation5] sm:$0xff] }
  0x1b   :  { %141 = vmatpush.msra.mxu1 %v1375_v9  ;;  %122 = vmatmul.f32.vlgmr.msra.gmra.mxu0 %v1308_v11  ;;  %v1423_v29 = vld [vmem:[%s1538_s4] ss:$0 sm:$0xff]  ;;  %s1309_s4 = smov [#allocation10]  }
  0x1c   :  { %142 = vmatmul.f32.vlgmr.msra.gmra.mxu1 %v1308_v11  ;;  %251 = vmatpush.msrb.mxu0 %v1354_v1  ;;  %v208_v42 = vld [vmem:[#allocation7] sm:$0xff]  ;;  %s1034_s13 = sshll.u32 %s1309_s4, 4  ;;  %s1035_s13 = int_to_ptr.vmem [resolvable:$true] %s1034_s13 }
  0x1d   :  { %271 = vmatpush.msrb.mxu1 %v1366_v6  ;;  %234 = vmatpush.msra.mxu3 %v1373_v8 }
  0x1e   :  { %161 = vmatpush.msra.mxu2 %v1387_v12  ;;  %252 = vmatpush.msrb.mxu0 %v1360_v3 }
  0x1f   :  { %162 = vmatmul.f32.vlgmr.msra.gmra.mxu2 %v1308_v11  ;;  %272 = vmatpush.msrb.mxu1 %v1371_v7 }
  0x20   :  { %253 = vmatpush.msrb.mxu0 %v1364_v5  ;;  %347 = vmatpush.msrb.mxu2 %v1352_v0 }
  0x21   :  { %273 = vmatpush.msrb.mxu1 %v1382_v10  ;;  %367 = vmatpush.msrb.mxu3 %v1354_v1 }
  0x22   :  { %254 = vmatpush.msrb.mxu0 %v1375_v9  ;;  %348 = vmatpush.msrb.mxu2 %v1356_v2 }
  0x23   :  { %274 = vmatpush.msrb.mxu1 %v1387_v12  ;;  %368 = vmatpush.msrb.mxu3 %v1360_v3 }
  0x24   :  { %387 = vmatpush.msra.mxu0 %v1366_v6  ;;  %349 = vmatpush.msrb.mxu2 %v1362_v4 }
  0x25   :  { %463 = vmatpush.msra.mxu1 %v1352_v0  ;;  %369 = vmatpush.msrb.mxu3 %v1364_v5 }
  0x26   :  { %388 = vmatpush.msra.mxu0 %v1371_v7  ;;  %350 = vmatpush.msrb.mxu2 %v1373_v8 }
  0x27   :  { %370 = vmatpush.msrb.mxu3 %v1375_v9  ;;  %464 = vmatpush.msra.mxu1 %v1356_v2 }
  0x28   :  { %389 = vmatpush.msra.mxu0 %v1382_v10  ;;  %483 = vmatpush.msra.mxu2 %v1354_v1 }
  0x29   :  { %465 = vmatpush.msra.mxu1 %v1362_v4 }
  0x2a   :  { %390 = vmatpush.msra.mxu0 %v1387_v12  ;;  %484 = vmatpush.msra.mxu2 %v1360_v3 }
  0x2b   :  { %466 = vmatpush.msra.mxu1 %v1373_v8 }
  0x2c   :  { %485 = vmatpush.msra.mxu2 %v1364_v5 }
  0x2e   :  { %486 = vmatpush.msra.mxu2 %v1375_v9 }
  0x98   :  { %v123_v15 = vpop.f32.mrf.mxu0 }
  0x99   :  { %v143_v16 = vpop.f32.mrf.mxu1  ;;  %v167_v17 = vadd.f32 %v166_v13, %v123_v15 }
  0x9a   :  { %v188_v18 = vadd.f32 %v187_v14, %v143_v16 }
  0x9b   :  { %v1048_v19 = vmul.f32 -1.442695, %v167_v17 }
  0x9c   :  { %v1049_v20 = vmul.f32 -1.442695, %v188_v18 }
  0x9d   :  { %1094 = vpow2.f32 %v1048_v19 }
  0x9e   :  { %1096 = vpow2.f32 %v1049_v20 }
  0xa2   :  { %v163_v32 = vpop.f32.mrf.mxu2 }
  0xa3   :  { %v1095_v21 = vpop.eup %1094  ;;  %v164_v37 = vadd.f32 %v1423_v29, %v163_v32 }
  0xa4   :  { %v1097_v22 = vpop.eup %1096  ;;  %v171_v23 = vadd.f32 1.0, %v1095_v21 }
  0xa5   :  { %v192_v24 = vadd.f32 1.0, %v1097_v22 }
  0xa6   :  { %1098 = vrcp.f32 %v171_v23  ;;  %v183_v33 = vand.u32 2147483648, %v171_v23  ;;  %v181_v35 = vand.u32 2147483647, %v171_v23  ;;  %vm177_vm1 = vweird.f32 %v171_v23 }
  0xa7   :  { %1100 = vrcp.f32 %v192_v24  ;;  %vm198_vm4 = vweird.f32 %v192_v24  ;;  %v204_v45 = vand.u32 2147483648, %v192_v24  ;;  %v202_v46 = vand.u32 2147483647, %v192_v24 }
  0xa8   :  { %v184_v39 = vor.u32 1.1754944e-38, %v183_v33  ;;  %vm182_vm3 = vcmp.eq.f32.partialorder %v181_v35, 8.507059e+37 }
  0xa9   :  { %v205_v49 = vor.u32 1.1754944e-38, %v204_v45  ;;  %vm203_vm7 = vcmp.eq.f32.partialorder %v202_v46, 8.507059e+37 }
  0xac   :  { %v1099_v25 = vpop.eup %1098 }
  0xad   :  { %v1101_v26 = vpop.eup %1100  ;;  %v173_v27 = vmul.f32 %v1099_v25, %v171_v23  ;;  %vm178_vm0 = vweird.f32 %v1099_v25 }
  0xae   :  { %v194_v28 = vmul.f32 %v1101_v26, %v192_v24  ;;  %vm179_vm2 = vmor %vm177_vm1, %vm178_vm0  ;;  %vm199_vm5 = vweird.f32 %v1101_v26 }
  0xaf   :  { %v174_v30 = vsub.f32 1.0, %v173_v27  ;;  %vm200_vm6 = vmor %vm198_vm4, %vm199_vm5 }
  0xb0   :  { %v195_v31 = vsub.f32 1.0, %v194_v28 }
  0xb1   :  { %v175_v34 = vmul.f32 %v1099_v25, %v174_v30 }
  0xb2   :  { %v196_v36 = vmul.f32 %v1101_v26, %v195_v31 }
  0xb3   :  { %v176_v38 = vadd.f32 %v1099_v25, %v175_v34  ;;  %v324_v34 = vld [vmem:[#allocation7 + $0x8] sm:$0xff] }
  0xb4   :  { %v197_v43 = vadd.f32 %v1101_v26, %v196_v36 }
  0xb5   :  { %v180_v40 = vsel %vm179_vm2, %v1099_v25, %v176_v38 }
  0xb6   :  { %v185_v41 = vsel %vm182_vm3, %v184_v39, %v180_v40  ;;  %v201_v48 = vsel %vm200_vm6, %v1101_v26, %v197_v43 }
  0xb7   :  { %v209_v44 = vmul.f32 %v185_v41, %v164_v37  ;;  %v206_v50 = vsel %vm203_vm7, %v205_v49, %v201_v48  ;;  %v418_v48 = vld [vmem:[#allocation5 + $0x10] sm:$0xff] }
  0xb8   :  { %v212_v51 = vsub.f32 1.0, %v206_v50  ;;  %v214_v54 = vmul.f32 0.0, %v206_v50 }
  0xb9   :  { %v210_v47 = vadd.f32 %v209_v44, %v208_v42 }
  0xbb   :  { %1102 = vtanh.f32 %v210_v47  ;;  %v396_v47 = vld [vmem:[#allocation2 + $0x10] sm:$0xff] }
  0xc1   :  { %v1103_v52 = vpop.eup %1102 }
  0xc2   :  { %v213_v53 = vmul.f32 %v1103_v52, %v212_v51 }
  0xc4   :  { %v1426_v55 = vadd.f32 %v214_v54, %v213_v53 }
  0xc6   :  { %1050 = vmatmul.msk.f32.vlgmr.msra.gmra.mxu3 %vm102_vm8, %v1426_v55  ;;  %1051 = vmatmul.msk.f32.vlgmr.msrb.gmra.mxu0 %vm102_vm8, %v1426_v55 }
  0xc7   :  { %1052 = vmatmul.msk.f32.vlgmr.msrb.gmra.mxu1 %vm102_vm8, %v1426_v55  ;;  %503 = vmatpush.msra.mxu3 %v1366_v6 }
  0xc8   :  { %579 = vmatpush.msrb.mxu0 %v1352_v0  ;;  %599 = vmatpush.msrb.mxu1 %v1354_v1 }
  0xc9   :  { %504 = vmatpush.msra.mxu3 %v1371_v7 }
  0xca   :  { %580 = vmatpush.msrb.mxu0 %v1356_v2  ;;  %600 = vmatpush.msrb.mxu1 %v1360_v3 }
  0xcb   :  { %505 = vmatpush.msra.mxu3 %v1382_v10 }
  0xcc   :  { %581 = vmatpush.msrb.mxu0 %v1362_v4  ;;  %601 = vmatpush.msrb.mxu1 %v1364_v5 }
  0xcd   :  { %506 = vmatpush.msra.mxu3 %v1387_v12 }
  0xce   :  { %582 = vmatpush.msrb.mxu0 %v1373_v8  ;;  %602 = vmatpush.msrb.mxu1 %v1375_v9 }
 0x143   :  { %v256_v57 = vpop.f32.mrf.mxu0 }
 0x144   :  { %v303_v58 = vadd.f32 %v302_v56, %v256_v57  ;;  %v276_v26 = vpop.f32.mrf.mxu1 }
 0x145   :  { %v277_v30 = vadd.f32 %v1423_v29, %v276_v26 }
 0x146   :  { %v1054_v59 = vmul.f32 -1.442695, %v303_v58 }
 0x148   :  { %1104 = vpow2.f32 %v1054_v59 }
 0x149   :  { %v236_v61 = vpop.f32.mrf.mxu3 }
 0x14a   :  { %v281_v62 = vadd.f32 %v280_v60, %v236_v61 }
 0x14c   :  { %v1053_v63 = vmul.f32 -1.442695, %v281_v62 }
 0x14e   :  { %v1105_v11 = vpop.eup %1104  ;;  %1106 = vpow2.f32 %v1053_v63 }
 0x14f   :  { %v307_v13 = vadd.f32 1.0, %v1105_v11 }
 0x151   :  { %1108 = vrcp.f32 %v307_v13  ;;  %v319_v35 = vand.u32 2147483648, %v307_v13  ;;  %vm313_vm14 = vweird.f32 %v307_v13  ;;  %v317_v37 = vand.u32 2147483647, %v307_v13 }
 0x153   :  { %v320_v40 = vor.u32 1.1754944e-38, %v319_v35  ;;  %vm318_vm0 = vcmp.eq.f32.partialorder %v317_v37, 8.507059e+37 }
 0x154   :  { %v1107_v14 = vpop.eup %1106 }
 0x155   :  { %v285_v15 = vadd.f32 1.0, %v1107_v14 }
 0x157   :  { %1110 = vrcp.f32 %v285_v15  ;;  %v1109_v16 = vpop.eup %1108  ;;  %v297_v22 = vand.u32 2147483648, %v285_v15  ;;  %v295_v24 = vand.u32 2147483647, %v285_v15  ;;  %vm291_vm10 = vweird.f32 %v285_v15 }
 0x158   :  { %v309_v17 = vmul.f32 %v1109_v16, %v307_v13  ;;  %vm314_vm13 = vweird.f32 %v1109_v16 }
 0x159   :  { %v298_v28 = vor.u32 1.1754944e-38, %v297_v22  ;;  %vm296_vm12 = vcmp.eq.f32.partialorder %v295_v24, 8.507059e+37  ;;  %vm315_vm15 = vmor %vm313_vm14, %vm314_vm13  ;;  %v440_v24 = vld [vmem:[#allocation7 + $0x10] sm:$0xff] }
 0x15a   :  { %v310_v20 = vsub.f32 1.0, %v309_v17 }
 0x15c   :  { %v311_v25 = vmul.f32 %v1109_v16, %v310_v20 }
 0x15d   :  { %v1111_v18 = vpop.eup %1110 }
 0x15e   :  { %v287_v19 = vmul.f32 %v1111_v18, %v285_v15  ;;  %vm292_vm9 = vweird.f32 %v1111_v18  ;;  %v312_v33 = vadd.f32 %v1109_v16, %v311_v25 }
 0x15f   :  { %vm293_vm11 = vmor %vm291_vm10, %vm292_vm9 }
 0x160   :  { %v288_v21 = vsub.f32 1.0, %v287_v19  ;;  %v316_v39 = vsel %vm315_vm15, %v1109_v16, %v312_v33 }
 0x161   :  { %v321_v41 = vsel %vm318_vm0, %v320_v40, %v316_v39 }
 0x162   :  { %v289_v23 = vmul.f32 %v1111_v18, %v288_v21  ;;  %v328_v42 = vsub.f32 1.0, %v321_v41  ;;  %v330_v45 = vmul.f32 %v321_v41, %v1426_v55 }
 0x164   :  { %v290_v27 = vadd.f32 %v1111_v18, %v289_v23 }
 0x166   :  { %v294_v31 = vsel %vm293_vm11, %v1111_v18, %v290_v27 }
 0x167   :  { %v299_v32 = vsel %vm296_vm12, %v298_v28, %v294_v31 }
 0x168   :  { %v325_v36 = vmul.f32 %v299_v32, %v277_v30 }
 0x16a   :  { %v326_v38 = vadd.f32 %v325_v36, %v324_v34 }
 0x16c   :  { %1112 = vtanh.f32 %v326_v38  ;;  %v512_v38 = vld [vmem:[#allocation2 + $0x18] sm:$0xff] }
 0x172   :  { %v1113_v43 = vpop.eup %1112 }
 0x173   :  { %v329_v44 = vmul.f32 %v1113_v43, %v328_v42  ;;  %v534_v42 = vld [vmem:[#allocation5 + $0x18] sm:$0xff] }
 0x175   :  { %v1448_v46 = vadd.f32 %v330_v45, %v329_v44 }
 0x177   :  { %1055 = vmatmul.msk.f32.vlgmr.msrb.gmra.mxu2 %vm102_vm8, %v1448_v46  ;;  %1056 = vmatmul.msk.f32.vlgmr.msrb.gmra.mxu3 %vm102_vm8, %v1448_v46 }
 0x178   :  { %1057 = vmatmul.msk.f32.vlgmr.msra.gmra.mxu0 %vm102_vm8, %v1448_v46  ;;  %619 = vmatpush.msrb.mxu2 %v1366_v6 }
 0x179   :  { %695 = vmatpush.msrb.mxu3 %v1352_v0  ;;  %715 = vmatpush.msra.mxu0 %v1354_v1 }
 0x17a   :  { %620 = vmatpush.msrb.mxu2 %v1371_v7 }
 0x17b   :  { %696 = vmatpush.msrb.mxu3 %v1356_v2  ;;  %716 = vmatpush.msra.mxu0 %v1360_v3 }
 0x17c   :  { %621 = vmatpush.msrb.mxu2 %v1382_v10 }
 0x17d   :  { %697 = vmatpush.msrb.mxu3 %v1362_v4  ;;  %717 = vmatpush.msra.mxu0 %v1364_v5 }
 0x17e   :  { %622 = vmatpush.msrb.mxu2 %v1387_v12 }
 0x17f   :  { %698 = vmatpush.msrb.mxu3 %v1373_v8  ;;  %718 = vmatpush.msra.mxu0 %v1375_v9 }
 0x1f5   :  { %v392_v16 = vpop.f32.mrf.mxu0 }
 0x1f6   :  { %v393_v20 = vadd.f32 %v1423_v29, %v392_v16 }
 0x1fa   :  { %v352_v49 = vpop.f32.mrf.mxu2  ;;  %v372_v50 = vpop.f32.mrf.mxu3 }
 0x1fb   :  { %v397_v51 = vadd.f32 %v396_v47, %v352_v49  ;;  %v419_v52 = vadd.f32 %v418_v48, %v372_v50 }
 0x1fd   :  { %v1058_v53 = vmul.f32 -1.442695, %v397_v51  ;;  %v1059_v54 = vmul.f32 -1.442695, %v419_v52 }
 0x1ff   :  { %1114 = vpow2.f32 %v1058_v53 }
 0x200   :  { %1116 = vpow2.f32 %v1059_v54 }
 0x205   :  { %v1115_v55 = vpop.eup %1114 }
 0x206   :  { %v1117_v56 = vpop.eup %1116  ;;  %v401_v57 = vadd.f32 1.0, %v1115_v55 }
 0x207   :  { %v423_v58 = vadd.f32 1.0, %v1117_v56 }
 0x208   :  { %1118 = vrcp.f32 %v401_v57  ;;  %v413_v11 = vand.u32 2147483648, %v401_v57  ;;  %v411_v15 = vand.u32 2147483647, %v401_v57  ;;  %vm407_vm2 = vweird.f32 %v401_v57 }
 0x209   :  { %1120 = vrcp.f32 %v423_v58  ;;  %v435_v26 = vand.u32 2147483648, %v423_v58  ;;  %vm429_vm6 = vweird.f32 %v423_v58  ;;  %v433_v27 = vand.u32 2147483647, %v423_v58 }
 0x20a   :  { %v414_v19 = vor.u32 1.1754944e-38, %v413_v11  ;;  %vm412_vm4 = vcmp.eq.f32.partialorder %v411_v15, 8.507059e+37 }
 0x20b   :  { %v436_v31 = vor.u32 1.1754944e-38, %v435_v26  ;;  %vm434_vm9 = vcmp.eq.f32.partialorder %v433_v27, 8.507059e+37 }
 0x20e   :  { %v1119_v59 = vpop.eup %1118 }
 0x20f   :  { %v1121_v60 = vpop.eup %1120  ;;  %v403_v61 = vmul.f32 %v1119_v59, %v401_v57  ;;  %vm408_vm1 = vweird.f32 %v1119_v59 }
 0x210   :  { %v425_v62 = vmul.f32 %v1121_v60, %v423_v58  ;;  %vm409_vm3 = vmor %vm407_vm2, %vm408_vm1  ;;  %vm430_vm5 = vweird.f32 %v1121_v60 }
 0x211   :  { %v404_v63 = vsub.f32 1.0, %v403_v61  ;;  %vm431_vm7 = vmor %vm429_vm6, %vm430_vm5 }
 0x212   :  { %v426_v13 = vsub.f32 1.0, %v425_v62 }
 0x213   :  { %v405_v14 = vmul.f32 %v1119_v59, %v404_v63 }
 0x214   :  { %v427_v17 = vmul.f32 %v1121_v60, %v426_v13  ;;  %v556_v13 = vld [vmem:[#allocation7 + $0x18] sm:$0xff] }
 0x215   :  { %v406_v18 = vadd.f32 %v1119_v59, %v405_v14 }
 0x216   :  { %v428_v23 = vadd.f32 %v1121_v60, %v427_v17 }
 0x217   :  { %v410_v21 = vsel %vm409_vm3, %v1119_v59, %v406_v18 }
 0x218   :  { %v415_v22 = vsel %vm412_vm4, %v414_v19, %v410_v21  ;;  %v432_v30 = vsel %vm431_vm7, %v1121_v60, %v428_v23 }
 0x219   :  { %v441_v25 = vmul.f32 %v415_v22, %v393_v20  ;;  %v437_v32 = vsel %vm434_vm9, %v436_v31, %v432_v30 }
 0x21a   :  { %v444_v33 = vsub.f32 1.0, %v437_v32  ;;  %v446_v36 = vmul.f32 %v437_v32, %v1448_v46 }
 0x21b   :  { %v442_v28 = vadd.f32 %v441_v25, %v440_v24 }
 0x21d   :  { %1122 = vtanh.f32 %v442_v28 }
 0x223   :  { %v1123_v34 = vpop.eup %1122 }
 0x224   :  { %v445_v35 = vmul.f32 %v1123_v34, %v444_v33 }
 0x226   :  { %v1470_v37 = vadd.f32 %v446_v36, %v445_v35 }
 0x228   :  { %1060 = vmatmul.msk.f32.vlgmr.msra.gmra.mxu1 %vm102_vm8, %v1470_v37  ;;  %1061 = vmatmul.msk.f32.vlgmr.msra.gmra.mxu2 %vm102_vm8, %v1470_v37 }
 0x229   :  { %1062 = vmatmul.msk.f32.vlgmr.msra.gmra.mxu3 %vm102_vm8, %v1470_v37  ;;  %735 = vmatpush.msra.mxu1 %v1366_v6 }
 0x22a   :  { %811 = vmatpush.msra.mxu2 %v1352_v0  ;;  %831 = vmatpush.msra.mxu3 %v1354_v1 }
 0x22b   :  { %736 = vmatpush.msra.mxu1 %v1371_v7 }
 0x22c   :  { %812 = vmatpush.msra.mxu2 %v1356_v2  ;;  %832 = vmatpush.msra.mxu3 %v1360_v3 }
 0x22d   :  { %737 = vmatpush.msra.mxu1 %v1382_v10 }
 0x22e   :  { %813 = vmatpush.msra.mxu2 %v1362_v4  ;;  %833 = vmatpush.msra.mxu3 %v1364_v5 }
 0x22f   :  { %738 = vmatpush.msra.mxu1 %v1387_v12 }
 0x230   :  { %814 = vmatpush.msra.mxu2 %v1373_v8  ;;  %834 = vmatpush.msra.mxu3 %v1375_v9 }
 0x2a5   :  { %v468_v39 = vpop.f32.mrf.mxu1 }
 0x2a6   :  { %v513_v40 = vadd.f32 %v512_v38, %v468_v39 }
 0x2a8   :  { %v1063_v41 = vmul.f32 -1.442695, %v513_v40 }
 0x2aa   :  { %1124 = vpow2.f32 %v1063_v41 }
 0x2ab   :  { %v488_v43 = vpop.f32.mrf.mxu2 }
 0x2ac   :  { %v535_v44 = vadd.f32 %v534_v42, %v488_v43  ;;  %v508_v57 = vpop.f32.mrf.mxu3 }
 0x2ad   :  { %v509_v62 = vadd.f32 %v1423_v29, %v508_v57 }
 0x2ae   :  { %v1064_v45 = vmul.f32 -1.442695, %v535_v44 }
 0x2b0   :  { %v1125_v46 = vpop.eup %1124  ;;  %1126 = vpow2.f32 %v1064_v45 }
 0x2b1   :  { %v517_v47 = vadd.f32 1.0, %v1125_v46 }
 0x2b3   :  { %1128 = vrcp.f32 %v517_v47  ;;  %v529_v53 = vand.u32 2147483648, %v517_v47  ;;  %v527_v55 = vand.u32 2147483647, %v517_v47  ;;  %vm523_vm11 = vweird.f32 %v517_v47 }
 0x2b5   :  { %v530_v60 = vor.u32 1.1754944e-38, %v529_v53  ;;  %vm528_vm13 = vcmp.eq.f32.partialorder %v527_v55, 8.507059e+37 }
 0x2b6   :  { %v1127_v48 = vpop.eup %1126 }
 0x2b7   :  { %v539_v49 = vadd.f32 1.0, %v1127_v48 }
 0x2b9   :  { %v1129_v50 = vpop.eup %1128  ;;  %1130 = vrcp.f32 %v539_v49  ;;  %v551_v15 = vand.u32 2147483648, %v539_v49  ;;  %v549_v17 = vand.u32 2147483647, %v539_v49  ;;  %vm545_vm15 = vweird.f32 %v539_v49 }
 0x2ba   :  { %v519_v51 = vmul.f32 %v1129_v50, %v517_v47  ;;  %vm524_vm10 = vweird.f32 %v1129_v50 }
 0x2bb   :  { %vm525_vm12 = vmor %vm523_vm11, %vm524_vm10  ;;  %v552_v20 = vor.u32 1.1754944e-38, %v551_v15  ;;  %vm550_vm1 = vcmp.eq.f32.partialorder %v549_v17, 8.507059e+37  ;;  %v744_v15 = vld [vmem:[#allocation2 + $0x28] sm:$0xff] }
 0x2bc   :  { %v520_v52 = vsub.f32 1.0, %v519_v51 }
 0x2be   :  { %v521_v54 = vmul.f32 %v1129_v50, %v520_v52 }
 0x2bf   :  { %v1131_v56 = vpop.eup %1130 }
 0x2c0   :  { %v541_v58 = vmul.f32 %v1131_v56, %v539_v49  ;;  %v522_v59 = vadd.f32 %v1129_v50, %v521_v54  ;;  %vm546_vm14 = vweird.f32 %v1131_v56 }
 0x2c1   :  { %vm547_vm0 = vmor %vm545_vm15, %vm546_vm14 }
 0x2c2   :  { %v542_v61 = vsub.f32 1.0, %v541_v58  ;;  %v526_v63 = vsel %vm525_vm12, %v1129_v50, %v522_v59  ;;  %v672_v50 = vld [vmem:[#allocation7 + $0x20] sm:$0xff] }
 0x2c3   :  { %v531_v11 = vsel %vm528_vm13, %v530_v60, %v526_v63  ;;  %v766_v63 = vld [vmem:[#allocation5 + $0x28] sm:$0xff] }
 0x2c4   :  { %v543_v14 = vmul.f32 %v1131_v56, %v542_v61  ;;  %v557_v16 = vmul.f32 %v531_v11, %v509_v62 }
 0x2c6   :  { %v544_v18 = vadd.f32 %v1131_v56, %v543_v14  ;;  %v558_v19 = vadd.f32 %v557_v16, %v556_v13 }
 0x2c8   :  { %v548_v21 = vsel %vm547_vm0, %v1131_v56, %v544_v18  ;;  %1132 = vtanh.f32 %v558_v19 }
 0x2c9   :  { %v553_v22 = vsel %vm550_vm1, %v552_v20, %v548_v21 }
 0x2ca   :  { %v560_v23 = vsub.f32 1.0, %v553_v22  ;;  %v562_v26 = vmul.f32 %v553_v22, %v1470_v37 }
 0x2ce   :  { %v1133_v24 = vpop.eup %1132 }
 0x2cf   :  { %v561_v25 = vmul.f32 %v1133_v24, %v560_v23 }
 0x2d1   :  { %v1492_v27 = vadd.f32 %v562_v26, %v561_v25 }
 0x2d3   :  { %1065 = vmatmul.msk.f32.vlgmr.msrb.gmra.mxu0 %vm102_vm8, %v1492_v27  ;;  %1066 = vmatmul.msk.f32.vlgmr.msrb.gmra.mxu1 %vm102_vm8, %v1492_v27 }
 0x2d4   :  { %1067 = vmatmul.msk.f32.vlgmr.msrb.gmra.mxu2 %vm102_vm8, %v1492_v27  ;;  %851 = vmatpush.msrb.mxu0 %v1366_v6 }
 0x2d5   :  { %927 = vmatpush.msrb.mxu1 %v1352_v0  ;;  %947 = vmatpush.msrb.mxu2 %v1354_v1  ;;  %v628_v0 = vld [vmem:[#allocation2 + $0x20] sm:$0xff] }
 0x2d6   :  { %852 = vmatpush.msrb.mxu0 %v1371_v7  ;;  %v650_v1 = vld [vmem:[#allocation5 + $0x20] sm:$0xff] }
 0x2d7   :  { %928 = vmatpush.msrb.mxu1 %v1356_v2  ;;  %948 = vmatpush.msrb.mxu2 %v1360_v3 }
 0x2d8   :  { %853 = vmatpush.msrb.mxu0 %v1382_v10 }
 0x2d9   :  { %929 = vmatpush.msrb.mxu1 %v1362_v4  ;;  %949 = vmatpush.msrb.mxu2 %v1364_v5 }
 0x2da   :  { %854 = vmatpush.msrb.mxu0 %v1387_v12 }
 0x2db   :  { %930 = vmatpush.msrb.mxu1 %v1373_v8  ;;  %950 = vmatpush.msrb.mxu2 %v1375_v9 }
 0x350   :  { %v584_v28 = vpop.f32.mrf.mxu0  ;;  %v604_v30 = vpop.f32.mrf.mxu1 }
 0x351   :  { %v629_v31 = vadd.f32 %v628_v0, %v584_v28  ;;  %v651_v2 = vadd.f32 %v650_v1, %v604_v30 }
 0x353   :  { %v1068_v32 = vmul.f32 -1.442695, %v629_v31  ;;  %v1069_v3 = vmul.f32 -1.442695, %v651_v2 }
 0x355   :  { %1134 = vpow2.f32 %v1068_v32 }
 0x356   :  { %1136 = vpow2.f32 %v1069_v3 }
 0x357   :  { %v624_v43 = vpop.f32.mrf.mxu2 }
 0x358   :  { %v625_v46 = vadd.f32 %v1423_v29, %v624_v43  ;;  %v882_v43 = vld [vmem:[#allocation5 + $0x30] sm:$0xff] }
 0x35b   :  { %v1135_v33 = vpop.eup %1134 }
 0x35c   :  { %v1137_v4 = vpop.eup %1136  ;;  %v633_v34 = vadd.f32 1.0, %v1135_v33  ;;  %v788_v33 = vld [vmem:[#allocation7 + $0x28] sm:$0xff] }
 0x35d   :  { %v655_v5 = vadd.f32 1.0, %v1137_v4 }
 0x35e   :  { %1138 = vrcp.f32 %v633_v34  ;;  %v645_v39 = vand.u32 2147483648, %v633_v34  ;;  %v643_v41 = vand.u32 2147483647, %v633_v34  ;;  %vm639_vm3 = vweird.f32 %v633_v34 }
 0x35f   :  { %1140 = vrcp.f32 %v655_v5  ;;  %v667_v51 = vand.u32 2147483648, %v655_v5  ;;  %vm661_vm7 = vweird.f32 %v655_v5  ;;  %v665_v53 = vand.u32 2147483647, %v655_v5 }
 0x360   :  { %v646_v45 = vor.u32 1.1754944e-38, %v645_v39  ;;  %vm644_vm5 = vcmp.eq.f32.partialorder %v643_v41, 8.507059e+37 }
 0x361   :  { %v668_v56 = vor.u32 1.1754944e-38, %v667_v51  ;;  %vm666_vm10 = vcmp.eq.f32.partialorder %v665_v53, 8.507059e+37 }
 0x364   :  { %v1139_v35 = vpop.eup %1138 }
 0x365   :  { %v1141_v8 = vpop.eup %1140  ;;  %v635_v36 = vmul.f32 %v1139_v35, %v633_v34  ;;  %vm640_vm2 = vweird.f32 %v1139_v35 }
 0x366   :  { %v657_v9 = vmul.f32 %v1141_v8, %v655_v5  ;;  %vm641_vm4 = vmor %vm639_vm3, %vm640_vm2  ;;  %vm662_vm6 = vweird.f32 %v1141_v8 }
 0x367   :  { %v636_v37 = vsub.f32 1.0, %v635_v36  ;;  %vm663_vm9 = vmor %vm661_vm7, %vm662_vm6 }
 0x368   :  { %v658_v38 = vsub.f32 1.0, %v657_v9 }
 0x369   :  { %v637_v40 = vmul.f32 %v1139_v35, %v636_v37 }
 0x36a   :  { %v659_v42 = vmul.f32 %v1141_v8, %v658_v38 }
 0x36b   :  { %v638_v44 = vadd.f32 %v1139_v35, %v637_v40 }
 0x36c   :  { %v660_v48 = vadd.f32 %v1141_v8, %v659_v42  ;;  %v860_v42 = vld [vmem:[#allocation2 + $0x30] sm:$0xff] }
 0x36d   :  { %v642_v47 = vsel %vm641_vm4, %v1139_v35, %v638_v44 }
 0x36e   :  { %v647_v49 = vsel %vm644_vm5, %v646_v45, %v642_v47  ;;  %v664_v55 = vsel %vm663_vm9, %v1141_v8, %v660_v48 }
 0x36f   :  { %v673_v52 = vmul.f32 %v647_v49, %v625_v46  ;;  %v669_v57 = vsel %vm666_vm10, %v668_v56, %v664_v55 }
 0x370   :  { %v676_v58 = vsub.f32 1.0, %v669_v57  ;;  %v678_v61 = vmul.f32 %v669_v57, %v1492_v27 }
 0x371   :  { %v674_v54 = vadd.f32 %v673_v52, %v672_v50 }
 0x373   :  { %1142 = vtanh.f32 %v674_v54 }
 0x379   :  { %v1143_v59 = vpop.eup %1142 }
 0x37a   :  { %v677_v60 = vmul.f32 %v1143_v59, %v676_v58 }
 0x37c   :  { %v679_v62 = vadd.f32 %v678_v61, %v677_v60 }
 0x37e   :  { %1070 = vmatmul.msk.f32.vlgmr.msrb.gmra.mxu3 %vm102_vm8, %v679_v62  ;;  %1071 = vmatmul.msk.f32.vlgmr.msra.gmra.mxu0 %vm102_vm8, %v679_v62 }
 0x37f   :  { %1072 = vmatmul.msk.f32.vlgmr.msra.gmra.mxu1 %vm102_vm8, %v679_v62  ;;  %967 = vmatpush.msrb.mxu3 %v1366_v6 }
 0x381   :  { %968 = vmatpush.msrb.mxu3 %v1371_v7 }
 0x383   :  { %969 = vmatpush.msrb.mxu3 %v1382_v10 }
 0x385   :  { %970 = vmatpush.msrb.mxu3 %v1387_v12 }
 0x3fb   :  { %v720_v11 = vpop.f32.mrf.mxu0 }
 0x3fc   :  { %v767_v13 = vadd.f32 %v766_v63, %v720_v11  ;;  %v740_v1 = vpop.f32.mrf.mxu1 }
 0x3fd   :  { %v741_v31 = vadd.f32 %v1423_v29, %v740_v1 }
 0x3fe   :  { %v1074_v14 = vmul.f32 -1.442695, %v767_v13 }
 0x400   :  { %1144 = vpow2.f32 %v1074_v14 }
 0x401   :  { %v700_v16 = vpop.f32.mrf.mxu3 }
 0x402   :  { %v745_v17 = vadd.f32 %v744_v15, %v700_v16 }
 0x404   :  { %v1073_v18 = vmul.f32 -1.442695, %v745_v17 }
 0x406   :  { %v1145_v19 = vpop.eup %1144  ;;  %1146 = vpow2.f32 %v1073_v18 }
 0x407   :  { %v771_v20 = vadd.f32 1.0, %v1145_v19  ;;  %v904_v19 = vld [vmem:[#allocation7 + $0x30] sm:$0xff] }
 0x409   :  { %1148 = vrcp.f32 %v771_v20  ;;  %v783_v4 = vand.u32 2147483648, %v771_v20  ;;  %vm777_vm0 = vweird.f32 %v771_v20  ;;  %v781_v5 = vand.u32 2147483647, %v771_v20 }
 0x40b   :  { %v784_v36 = vor.u32 1.1754944e-38, %v783_v4  ;;  %vm782_vm2 = vcmp.eq.f32.partialorder %v781_v5, 8.507059e+37 }
 0x40c   :  { %v1147_v6 = vpop.eup %1146 }
 0x40d   :  { %v749_v21 = vadd.f32 1.0, %v1147_v6 }
 0x40f   :  { %1150 = vrcp.f32 %v749_v21  ;;  %v1149_v7 = vpop.eup %1148  ;;  %v761_v25 = vand.u32 2147483648, %v749_v21  ;;  %v759_v27 = vand.u32 2147483647, %v749_v21  ;;  %vm755_vm12 = vweird.f32 %v749_v21 }
 0x410   :  { %v773_v10 = vmul.f32 %v1149_v7, %v771_v20  ;;  %vm778_vm15 = vweird.f32 %v1149_v7 }
 0x411   :  { %v762_v30 = vor.u32 1.1754944e-38, %v761_v25  ;;  %vm760_vm14 = vcmp.eq.f32.partialorder %v759_v27, 8.507059e+37  ;;  %vm779_vm1 = vmor %vm777_vm0, %vm778_vm15 }
 0x412   :  { %v774_v23 = vsub.f32 1.0, %v773_v10 }
 0x414   :  { %v775_v0 = vmul.f32 %v1149_v7, %v774_v23 }
 0x415   :  { %v1151_v22 = vpop.eup %1150 }
 0x416   :  { %v751_v12 = vmul.f32 %v1151_v22, %v749_v21  ;;  %vm756_vm11 = vweird.f32 %v1151_v22  ;;  %v776_v32 = vadd.f32 %v1149_v7, %v775_v0  ;;  %v976_v0 = vld [vmem:[#allocation2 + $0x38] sm:$0xff] }
 0x417   :  { %vm757_vm13 = vmor %vm755_vm12, %vm756_vm11 }
 0x418   :  { %v752_v24 = vsub.f32 1.0, %v751_v12  ;;  %v780_v8 = vsel %vm779_vm1, %v1149_v7, %v776_v32 }
 0x419   :  { %v785_v9 = vsel %vm782_vm2, %v784_v36, %v780_v8 }
 0x41a   :  { %v753_v26 = vmul.f32 %v1151_v22, %v752_v24  ;;  %v792_v37 = vsub.f32 1.0, %v785_v9  ;;  %v794_v40 = vmul.f32 %v785_v9, %v679_v62 }
 0x41c   :  { %v754_v28 = vadd.f32 %v1151_v22, %v753_v26 }
 0x41e   :  { %v758_v2 = vsel %vm757_vm13, %v1151_v22, %v754_v28 }
 0x41f   :  { %v763_v3 = vsel %vm760_vm14, %v762_v30, %v758_v2 }
 0x420   :  { %v789_v34 = vmul.f32 %v763_v3, %v741_v31  ;;  %v998_v31 = vld [vmem:[#allocation5 + $0x38] sm:$0xff] }
 0x422   :  { %v790_v35 = vadd.f32 %v789_v34, %v788_v33 }
 0x424   :  { %1152 = vtanh.f32 %v790_v35 }
 0x42a   :  { %v1153_v38 = vpop.eup %1152 }
 0x42b   :  { %v793_v39 = vmul.f32 %v1153_v38, %v792_v37 }
 0x42d   :  { %v795_v41 = vadd.f32 %v794_v40, %v793_v39 }
 0x42f   :  { %1075 = vmatmul.msk.f32.vlgmr.msra.gmra.mxu2 %vm102_vm8, %v795_v41  ;;  %1076 = vmatmul.msk.f32.vlgmr.msra.gmra.mxu3 %vm102_vm8, %v795_v41 }
 0x430   :  { %1077 = vmatmul.msk.f32.vlgmr.msrb.gmra.mxu0 %vm102_vm8, %v795_v41 }
 0x4ad   :  { %v856_v63 = vpop.f32.mrf.mxu0 }
 0x4ae   :  { %v857_v15 = vadd.f32 %v1423_v29, %v856_v63 }
 0x4b2   :  { %v816_v44 = vpop.f32.mrf.mxu2  ;;  %v836_v45 = vpop.f32.mrf.mxu3 }
 0x4b3   :  { %v861_v46 = vadd.f32 %v860_v42, %v816_v44  ;;  %v883_v47 = vadd.f32 %v882_v43, %v836_v45 }
 0x4b5   :  { %v1078_v48 = vmul.f32 -1.442695, %v861_v46  ;;  %v1079_v49 = vmul.f32 -1.442695, %v883_v47 }
 0x4b7   :  { %1154 = vpow2.f32 %v1078_v48  ;;  %v1020_v48 = vld [vmem:[#allocation7 + $0x38] sm:$0xff] }
 0x4b8   :  { %1156 = vpow2.f32 %v1079_v49 }
 0x4bd   :  { %v1155_v50 = vpop.eup %1154 }
 0x4be   :  { %v1157_v51 = vpop.eup %1156  ;;  %v865_v52 = vadd.f32 1.0, %v1155_v50 }
 0x4bf   :  { %v887_v53 = vadd.f32 1.0, %v1157_v51 }
 0x4c0   :  { %1158 = vrcp.f32 %v865_v52  ;;  %v877_v59 = vand.u32 2147483648, %v865_v52  ;;  %v875_v62 = vand.u32 2147483647, %v865_v52  ;;  %vm871_vm4 = vweird.f32 %v865_v52 }
 0x4c1   :  { %1160 = vrcp.f32 %v887_v53  ;;  %v899_v6 = vand.u32 2147483648, %v887_v53  ;;  %vm893_vm9 = vweird.f32 %v887_v53  ;;  %v897_v21 = vand.u32 2147483647, %v887_v53 }
 0x4c2   :  { %v878_v14 = vor.u32 1.1754944e-38, %v877_v59  ;;  %vm876_vm6 = vcmp.eq.f32.partialorder %v875_v62, 8.507059e+37 }
 0x4c3   :  { %v900_v22 = vor.u32 1.1754944e-38, %v899_v6  ;;  %vm898_vm11 = vcmp.eq.f32.partialorder %v897_v21, 8.507059e+37 }
 0x4c6   :  { %v1159_v54 = vpop.eup %1158 }
 0x4c7   :  { %v1161_v55 = vpop.eup %1160  ;;  %v867_v56 = vmul.f32 %v1159_v54, %v865_v52  ;;  %vm872_vm3 = vweird.f32 %v1159_v54 }
 0x4c8   :  { %v889_v57 = vmul.f32 %v1161_v55, %v887_v53  ;;  %vm873_vm5 = vmor %vm871_vm4, %vm872_vm3  ;;  %vm894_vm7 = vweird.f32 %v1161_v55 }
 0x4c9   :  { %v868_v58 = vsub.f32 1.0, %v867_v56  ;;  %vm895_vm10 = vmor %vm893_vm9, %vm894_vm7 }
 0x4ca   :  { %v890_v60 = vsub.f32 1.0, %v889_v57 }
 0x4cb   :  { %v869_v61 = vmul.f32 %v1159_v54, %v868_v58 }
 0x4cc   :  { %v891_v11 = vmul.f32 %v1161_v55, %v890_v60 }
 0x4cd   :  { %v870_v13 = vadd.f32 %v1159_v54, %v869_v61 }
 0x4ce   :  { %v892_v18 = vadd.f32 %v1161_v55, %v891_v11 }
 0x4cf   :  { %v874_v16 = vsel %vm873_vm5, %v1159_v54, %v870_v13 }
 0x4d0   :  { %v879_v17 = vsel %vm876_vm6, %v878_v14, %v874_v16  ;;  %v896_v10 = vsel %vm895_vm10, %v1161_v55, %v892_v18 }
 0x4d1   :  { %v905_v20 = vmul.f32 %v879_v17, %v857_v15  ;;  %v901_v12 = vsel %vm898_vm11, %v900_v22, %v896_v10 }
 0x4d2   :  { %v908_v23 = vsub.f32 1.0, %v901_v12  ;;  %v910_v26 = vmul.f32 %v901_v12, %v795_v41 }
 0x4d3   :  { %v906_v7 = vadd.f32 %v905_v20, %v904_v19 }
 0x4d5   :  { %1162 = vtanh.f32 %v906_v7 }
 0x4db   :  { %v1163_v24 = vpop.eup %1162 }
 0x4dc   :  { %v909_v25 = vmul.f32 %v1163_v24, %v908_v23 }
 0x4de   :  { %v911_v27 = vadd.f32 %v910_v26, %v909_v25 }
 0x4e0   :  { %1080 = vmatmul.msk.f32.vlgmr.msrb.gmra.mxu1 %vm102_vm8, %v911_v27  ;;  %1081 = vmatmul.msk.f32.vlgmr.msrb.gmra.mxu2 %vm102_vm8, %v911_v27 }
 0x4e1   :  { %1082 = vmatmul.msk.f32.vlgmr.msrb.gmra.mxu3 %vm102_vm8, %v911_v27 }
 0x55d   :  { %v932_v1 = vpop.f32.mrf.mxu1 }
 0x55e   :  { %v977_v28 = vadd.f32 %v976_v0, %v932_v1 }
 0x560   :  { %v1083_v30 = vmul.f32 -1.442695, %v977_v28 }
 0x562   :  { %1164 = vpow2.f32 %v1083_v30 }
 0x563   :  { %v952_v2 = vpop.f32.mrf.mxu2 }
 0x564   :  { %v999_v32 = vadd.f32 %v998_v31, %v952_v2  ;;  %v972_v40 = vpop.f32.mrf.mxu3 }
 0x565   :  { %v973_v45 = vadd.f32 %v1423_v29, %v972_v40 }
 0x566   :  { %v1084_v3 = vmul.f32 -1.442695, %v999_v32 }
 0x568   :  { %v1165_v33 = vpop.eup %1164  ;;  %1166 = vpow2.f32 %v1084_v3 }
 0x569   :  { %v981_v4 = vadd.f32 1.0, %v1165_v33 }
 0x56b   :  { %1168 = vrcp.f32 %v981_v4  ;;  %v993_v9 = vand.u32 2147483648, %v981_v4  ;;  %v991_v38 = vand.u32 2147483647, %v981_v4  ;;  %vm987_vm13 = vweird.f32 %v981_v4 }
 0x56d   :  { %v994_v43 = vor.u32 1.1754944e-38, %v993_v9  ;;  %vm992_vm15 = vcmp.eq.f32.partialorder %v991_v38, 8.507059e+37 }
 0x56e   :  { %v1167_v34 = vpop.eup %1166 }
 0x56f   :  { %v1003_v5 = vadd.f32 1.0, %v1167_v34 }
 0x571   :  { %v1169_v35 = vpop.eup %1168  ;;  %1170 = vrcp.f32 %v1003_v5  ;;  %v1015_v50 = vand.u32 2147483648, %v1003_v5  ;;  %v1013_v52 = vand.u32 2147483647, %v1003_v5  ;;  %vm1009_vm1 = vweird.f32 %v1003_v5 }
 0x572   :  { %v983_v8 = vmul.f32 %v1169_v35, %v981_v4  ;;  %vm988_vm12 = vweird.f32 %v1169_v35 }
 0x573   :  { %vm989_vm14 = vmor %vm987_vm13, %vm988_vm12  ;;  %v1016_v56 = vor.u32 1.1754944e-38, %v1015_v50  ;;  %vm1014_vm3 = vcmp.eq.f32.partialorder %v1013_v52, 8.507059e+37 }
 0x574   :  { %v984_v36 = vsub.f32 1.0, %v983_v8 }
 0x576   :  { %v985_v37 = vmul.f32 %v1169_v35, %v984_v36 }
 0x577   :  { %v1171_v39 = vpop.eup %1170 }
 0x578   :  { %v1005_v41 = vmul.f32 %v1171_v39, %v1003_v5  ;;  %v986_v42 = vadd.f32 %v1169_v35, %v985_v37  ;;  %vm1010_vm0 = vweird.f32 %v1171_v39 }
 0x579   :  { %vm1011_vm2 = vmor %vm1009_vm1, %vm1010_vm0 }
 0x57a   :  { %v1006_v44 = vsub.f32 1.0, %v1005_v41  ;;  %v990_v46 = vsel %vm989_vm14, %v1169_v35, %v986_v42 }
 0x57b   :  { %v995_v47 = vsel %vm992_vm15, %v994_v43, %v990_v46 }
 0x57c   :  { %v1007_v49 = vmul.f32 %v1171_v39, %v1006_v44  ;;  %v1021_v51 = vmul.f32 %v995_v47, %v973_v45 }
 0x57e   :  { %v1022_v53 = vadd.f32 %v1021_v51, %v1020_v48  ;;  %v1008_v54 = vadd.f32 %v1171_v39, %v1007_v49 }
 0x580   :  { %1172 = vtanh.f32 %v1022_v53  ;;  %v1012_v55 = vsel %vm1011_vm2, %v1171_v39, %v1008_v54 }
 0x581   :  { %v1017_v57 = vsel %vm1014_vm3, %v1016_v56, %v1012_v55 }
 0x582   :  { %v1024_v58 = vsub.f32 1.0, %v1017_v57  ;;  %v1026_v60 = vmul.f32 %v1017_v57, %v911_v27 }
 0x586   :  { %v1173_v29 = vpop.eup %1172 }
 0x587   :  { %v1025_v59 = vmul.f32 %v1173_v29, %v1024_v58 }
 0x589   :  { %v1027_v61 = vadd.f32 %v1026_v60, %v1025_v59 }
 0x58b   :  { %1028 = vst.msk [vmem:[#allocation10] sm:$0xff] %vm102_vm8, %v1027_v61 }
 0x58c   :  { %1039 = dma.vmem_to_hbm [thread:$0]  %s1035_s13, 128, %s1037_s16, [#allocation4]  }
 0x58d   :  { %1300 = dma.done.wait [#allocation4], 128  }
 0x58e   :  { %1301 = vsyncadd [#allocation4], 4294967168 }
 0x58f   :  { %1044 = vsyncpa [#allocation3], 1 }
 0x590   :  { %1045 = vsyncpa [#allocation6], 1 }
 0x591   :  { %1046 = vsyncpa [#allocation9], 1 }
 0x592   :  { %1047 = vsyncpa [#allocation4], 1 }

</bundles_post_ra>
